<compile_context>
chip_gen: v5e
topology: v5e:2x2
jax: 0.10.0
libtpu: 0.0.40
codegen_flags: <defaults>
</compile_context>

<pallas_src>
import functools

import jax
import jax.numpy as jnp
from jax.experimental import pallas as pl
from jax.experimental.pallas import tpu as pltpu


def _round_up(n, m):
    return ((n + m - 1) // m) * m


def _largest_dividing_tile(total, cap, base=128):
    """Largest multiple of `base` that divides `total` (a multiple of base) and is <= cap."""
    m = total // base
    best = 1
    max_d = min(m, max(cap // base, 1))
    d = 1
    while d <= max_d:
        if m % d == 0:
            best = d
        d += 1
    return best * base


def _choose_k_tiling(f, max_tk=2048):
    """Return (F_pad, tk): F padded to a multiple of 128, tk divides F_pad exactly."""
    f_pad = _round_up(max(int(f), 1), 128)
    if f_pad <= max_tk:
        return f_pad, f_pad                      # single K step
    tk = _largest_dividing_tile(f_pad, max_tk)
    if tk >= min(512, max_tk):
        return f_pad, tk                         # no extra zero-padding needed
    # Awkward F (e.g. prime * 128): bounded extra padding buys wide contiguous DMAs.
    tk = min(512, max_tk)
    return _round_up(f_pad, tk), tk


def _choose_n_tiling(o, max_tn=512):
    """Return (O_pad, tn): lane-dense padded output width and an exact output tile."""
    o_pad = _round_up(max(int(o), 1), 128)
    if o_pad <= max_tn:
        return o_pad, o_pad
    return o_pad, _largest_dividing_tile(o_pad, max_tn)


def _epilogue(y, *, loss, b_actual):
    """Bias already added; apply the task-dependent activation (f32 in, f32 out)."""
    if loss == "bce":
        return jax.nn.sigmoid(y)
    if loss == "ce":
        # nn.Softmax(dim=0): normalize over the batch axis, per output column.
        # Padded batch rows must not contribute -> mask them to -inf (exp -> 0).
        if b_actual < y.shape[0]:
            row = jax.lax.broadcasted_iota(jnp.int32, y.shape, 0)
            y = jnp.where(row < b_actual, y, -jnp.inf)
        y = y - jnp.max(y, axis=0, keepdims=True)
        e = jnp.exp(y)
        s = jnp.sum(e, axis=0, keepdims=True)
        return e * pl.reciprocal(s, approx=True)   # EUP slot; epilogue runs once per tile
    # 'mse' / 'angle-loss': plain Linear, no activation
    return y


def _linear_act_kernel_1k(x_ref, w_ref, b_ref, o_ref, *, loss, b_actual):
    """Fast path: single K step -> no accumulator scratch, dot -> +bias -> act -> store."""
    y = jnp.dot(x_ref[...], w_ref[...], preferred_element_type=jnp.float32) + b_ref[...]
    o_ref[...] = _epilogue(y, loss=loss, b_actual=b_actual).astype(o_ref.dtype)


def _linear_act_kernel(x_ref, w_ref, b_ref, o_ref, acc_ref, *, loss, b_actual):
    """grid = (O_pad//tn [parallel], F_pad//tk [arbitrary]); f32 accumulator across K."""
    k = pl.program_id(1)

    @pl.when(k == 0)
    def _():
        acc_ref[...] = jnp.zeros_like(acc_ref)

    # bf16 x bf16 -> f32 accumulate on the MXU.
    acc_ref[...] += jnp.dot(x_ref[...], w_ref[...], preferred_element_type=jnp.float32)

    @pl.when(k == pl.num_programs(1) - 1)
    def _():
        y = acc_ref[...] + b_ref[...]          # bias kept in f32
        o_ref[...] = _epilogue(y, loss=loss, b_actual=b_actual).astype(o_ref.dtype)


@functools.partial(jax.jit, static_argnames=("loss", "n_out"))
def _forward_impl(x, w_tiled, b_pad, *, loss, n_out):
    """x: (B, ...) float; w_tiled: (n_k, n_j, tk, tn) bf16; b_pad: (1, O_pad) f32."""
    B = x.shape[0]
    x2d = jnp.reshape(x, (B, -1))
    F = x2d.shape[1]
    n_k, n_j, tk, tn = w_tiled.shape
    F_pad, O_pad = n_k * tk, n_j * tn
    assert F <= F_pad

    B_pad = _round_up(max(B, 1), 16)           # bf16 packs [16,128] per vreg
    # Single fused pad+cast; zero rows/cols contribute nothing to the matmul.
    x_p = jnp.pad(x2d.astype(jnp.bfloat16), ((0, B_pad - B), (0, F_pad - F)))

    if n_k == 1:
        kernel = functools.partial(_linear_act_kernel_1k, loss=loss, b_actual=B)
        grid = (n_j,)
        in_specs = [
            pl.BlockSpec((B_pad, F_pad), lambda j: (0, 0)),            # activations
            pl.BlockSpec((None, None, tk, tn), lambda j: (0, j, 0, 0)),  # weights (pre-tiled)
            pl.BlockSpec((1, tn), lambda j: (0, j)),                    # bias
        ]
        out_spec = pl.BlockSpec((B_pad, tn), lambda j: (0, j))
        scratch = []
        dim_sem = ("parallel",)
        bytes_needed = (2 * tk * tn * 2 + B_pad * F_pad * 2 + 2 * tn * 4
                        + 2 * B_pad * tn * 4)
    else:
        kernel = functools.partial(_linear_act_kernel, loss=loss, b_actual=B)
        grid = (n_j, n_k)
        n_wbuf = 3 if n_k >= 3 else 2          # 3rd weight buffer hides DMA jitter
        w_kwargs = {"pipeline_mode": pl.Buffered(n_wbuf)} if n_wbuf != 2 else {}
        in_specs = [
            pl.BlockSpec((B_pad, tk), lambda j, k: (0, k)),                        # stream K
            pl.BlockSpec((None, None, tk, tn), lambda j, k: (k, j, 0, 0), **w_kwargs),
            pl.BlockSpec((1, tn), lambda j, k: (0, j)),
        ]
        out_spec = pl.BlockSpec((B_pad, tn), lambda j, k: (0, j))      # resident across K
        scratch = [pltpu.VMEM((B_pad, tn), jnp.float32)]
        dim_sem = ("parallel", "arbitrary")
        bytes_needed = (n_wbuf * tk * tn * 2 + 2 * B_pad * tk * 2 + 2 * tn * 4
                        + 2 * B_pad * tn * 4 + B_pad * tn * 4)

    # 2x headroom, but stay well under v7x's 64 MiB physical VMEM.
    vmem_limit = int(min(max(2 * bytes_needed, 4 << 20), 48 << 20))

    out = pl.pallas_call(
        kernel,
        out_shape=jax.ShapeDtypeStruct((B_pad, O_pad), jnp.float32),
        grid=grid,
        in_specs=in_specs,
        out_specs=out_spec,
        scratch_shapes=scratch,
        compiler_params=pltpu.CompilerParams(
            dimension_semantics=dim_sem,
            vmem_limit_bytes=vmem_limit,
        ),
    )(x_p, w_tiled, b_pad)

    return out[:B, :n_out]


class BaseNet:
    """JAX/Pallas port of the BaseNet common functionality (output layer + activation)."""

    def __init__(self, model_name, path, loss, input_shape, output_shape,
                 epochs=50, verbose=True, model_number=0, key=None, max_tk=2048):
        self.input_shape = input_shape
        self.epochs = epochs
        self.verbose = verbose
        self.model_number = model_number
        self.timesamples = input_shape[0]
        self.nb_channels = input_shape[1]
        self.early_stopped = False
        self.loss = loss
        self.path = path
        self.model_name = model_name

        if loss not in ("bce", "ce", "mse", "angle-loss"):
            raise ValueError("Choose a valid task")

        nb_features = self.get_nb_features_output_layer()
        self.nb_features = nb_features
        self.n_out = output_shape
        self.f_pad, self.tk = _choose_k_tiling(nb_features, max_tk=max_tk)
        self.o_pad, self.tn = _choose_n_tiling(output_shape)

        if key is None:
            key = jax.random.PRNGKey(0)
        kw, kb = jax.random.split(key)
        # Deterministic init mimicking nn.Linear's uniform(-1/sqrt(fan_in), 1/sqrt(fan_in))
        bound = 1.0 / jnp.sqrt(jnp.float32(nb_features))
        w = jax.random.uniform(kw, (nb_features, output_shape),
                               dtype=jnp.float32, minval=-bound, maxval=bound)
        b = jax.random.uniform(kb, (1, output_shape),
                               dtype=jnp.float32, minval=-bound, maxval=bound)

        # One-time host re-layout: zero-pad, cast to bf16 and re-tile the (in, out)
        # weight into a block-contiguous (n_k, n_j, tk, tn) layout so each grid step's
        # weight tile is a single contiguous HBM DMA.
        # TODO(synk): torch Linear stores (out, in); the transposed (in, out) layout is
        # numerically equivalent for the forward pass.
        n_k, n_j = self.f_pad // self.tk, self.o_pad // self.tn
        w_full = (jnp.zeros((self.f_pad, self.o_pad), jnp.bfloat16)
                  .at[:nb_features, :output_shape].set(w.astype(jnp.bfloat16)))
        self.w_tiled = w_full.reshape(n_k, self.tk, n_j, self.tn).transpose(0, 2, 1, 3)
        self.b = (jnp.zeros((1, self.o_pad), jnp.float32)
                  .at[:, :output_shape].set(b))

    def get_nb_features_output_layer(self):
        # TODO(synk): abstract in torch (defined by ConvNet/EEGNet subclasses); for the
        # base module we use the flattened input size timesamples * nb_channels.
        return self.timesamples * self.nb_channels

    def dense_params(self):
        """Un-tiled (features, out) f32 weight and (1, out) bias, for reference checks."""
        n_k, n_j, tk, tn = self.w_tiled.shape
        w = self.w_tiled.transpose(0, 2, 1, 3).reshape(n_k * tk, n_j * tn)
        return (w[:self.nb_features, :self.n_out].astype(jnp.float32),
                self.b[:, :self.n_out])

    def forward(self, x):
        # TODO(synk): torch BaseNet.forward is abstract (subclass feature extractor);
        # here we apply the shared output_layer to the flattened input.
        return _forward_impl(x, self.w_tiled, self.b, loss=self.loss, n_out=self.n_out)

    __call__ = forward


if __name__ == "__main__":
    key = jax.random.PRNGKey(0)
    kx, kp1, kp2, kx2, kp3 = jax.random.split(key, 5)

    # --- small single-K-step case: 16 timesamples x 4 channels = 64 features, 8 outputs
    batch, timesamples, nb_channels, output_shape = 2, 16, 4, 8
    x = jax.random.normal(kx, (batch, timesamples, nb_channels), dtype=jnp.float32)
    x_bf = jnp.reshape(x, (batch, -1)).astype(jnp.bfloat16).astype(jnp.float32)

    # 'bce' path (Linear + Sigmoid)
    m_bce = BaseNet("basenet", "/tmp/", "bce", (timesamples, nb_channels),
                    output_shape, key=kp1)
    out_bce = jax.block_until_ready(m_bce(x))
    w_f, b_f = m_bce.dense_params()
    ref_bce = jax.nn.sigmoid(x_bf @ w_f + b_f)
    assert out_bce.shape == (batch, output_shape)
    assert jnp.allclose(out_bce, ref_bce, atol=1e-4, rtol=1e-4)

    # 'ce' path (Linear + Softmax over the BATCH axis, dim=0, as in the torch module)
    m_ce = BaseNet("basenet", "/tmp/", "ce", (timesamples, nb_channels),
                   output_shape, key=kp2)
    out_ce = jax.block_until_ready(m_ce(x))
    w_f, b_f = m_ce.dense_params()
    ref_ce = jax.nn.softmax(x_bf @ w_f + b_f, axis=0)
    assert out_ce.shape == (batch, output_shape)
    assert jnp.allclose(out_ce, ref_ce, atol=2e-3, rtol=2e-3)   # approx recip in epilogue

    # 'mse' path (plain Linear); max_tk forced small to exercise the multi-K
    # accumulator path (384 features -> 3 K steps of 128, Buffered(3) weight pipeline).
    t2, c2 = 16, 24
    x2 = jax.random.normal(kx2, (batch, t2, c2), dtype=jnp.float32)
    x2_bf = jnp.reshape(x2, (batch, -1)).astype(jnp.bfloat16).astype(jnp.float32)
    m_mse = BaseNet("basenet", "/tmp/", "mse", (t2, c2), output_shape,
                    key=kp3, max_tk=128)
    out_mse = jax.block_until_ready(m_mse(x2))
    w_f, b_f = m_mse.dense_params()
    ref_mse = x2_bf @ w_f + b_f
    assert out_mse.shape == (batch, output_shape)
    assert jnp.allclose(out_mse, ref_mse, atol=1e-4, rtol=1e-4)

    print("KERNEL_OK")
</pallas_src>

<mosaic_0001>
module attributes {stable_mosaic.version = 11 : i64} {
  func.func @_linear_act_kernel_1k(%arg0: i32, %arg1: memref<16x128xbf16, #tpu.memory_space<vmem>>, %arg2: memref<1x1x128x128xbf16, #tpu.memory_space<vmem>>, %arg3: memref<1x128xf32, #tpu.memory_space<vmem>>, %arg4: memref<16x128xf32, #tpu.memory_space<vmem>>) attributes {dimension_semantics = [#tpu.dimension_semantics<parallel>], iteration_bounds = array<i64: 1>, scalar_prefetch = 0 : i64, scratch_operands = 0 : i64, tpu.core_type = #tpu.core_type<tc>, window_params = [{pipeline_mode = #tpu.pipeline_mode<synchronous>, transform_indices = @transform_0, window_bounds = array<i64: 16, 128>}, {transform_indices = @transform_1, window_bounds = array<i64: 1, 1, 128, 128>}, {transform_indices = @transform_2, window_bounds = array<i64: 1, 128>}, {transform_indices = @transform_3, window_bounds = array<i64: 16, 128>}]} {
    %c0 = arith.constant 0 : index
    %c0_0 = arith.constant 0 : index
    %0 = vector.load %arg1[%c0, %c0_0] : memref<16x128xbf16, #tpu.memory_space<vmem>>, vector<16x128xbf16>
    %c0_1 = arith.constant 0 : index
    %c0_2 = arith.constant 0 : index
    %c0_3 = arith.constant 0 : index
    %c0_4 = arith.constant 0 : index
    %1 = vector.load %arg2[%c0_1, %c0_2, %c0_3, %c0_4] : memref<1x1x128x128xbf16, #tpu.memory_space<vmem>>, vector<1x1x128x128xbf16>
    %2 = vector.shape_cast %1 : vector<1x1x128x128xbf16> to vector<128x128xbf16>
    %cst = arith.constant dense<0.000000e+00> : vector<16x128xf32>
    %3 = tpu.matmul %0, %2, %cst {dimension_numbers = #tpu.dot_dimension_numbers<[1], [0], [0], [1], [0, 0, 1, 1], [], []>} : vector<16x128xbf16>, vector<128x128xbf16>, vector<16x128xf32> -> vector<16x128xf32>
    %c0_5 = arith.constant 0 : index
    %c0_6 = arith.constant 0 : index
    %4 = vector.load %arg3[%c0_5, %c0_6] : memref<1x128xf32, #tpu.memory_space<vmem>>, vector<1x128xf32>
    %5 = vector.broadcast %4 : vector<1x128xf32> to vector<16x128xf32>
    %6 = arith.addf %3, %5 : vector<16x128xf32>
    %7 = arith.negf %6 : vector<16x128xf32>
    %8 = math.exp %7 : vector<16x128xf32>
    %cst_7 = arith.constant 1.000000e+00 : f32
    %9 = vector.broadcast %cst_7 : f32 to vector<16x128xf32>
    %10 = arith.addf %9, %8 : vector<16x128xf32>
    %11 = arith.divf %9, %10 : vector<16x128xf32>
    %c0_8 = arith.constant 0 : index
    %c0_9 = arith.constant 0 : index
    %12 = vector.load %arg4[%c0_8, %c0_9] : memref<16x128xf32, #tpu.memory_space<vmem>>, vector<16x128xf32>
    tpu.vector_store %arg4[%c0_8, %c0_9], %11 {strides = array<i32>} : memref<16x128xf32, #tpu.memory_space<vmem>>, vector<16x128xf32>,
    return
  }
  func.func @transform_0(%arg0: i32) -> (i32, i32) {
    %c0_i32 = arith.constant 0 : i32
    %c0_i32_0 = arith.constant 0 : i32
    %c0_i32_1 = arith.constant 0 : i32
    return %c0_i32, %c0_i32_0 : i32, i32
  }
  func.func @transform_1(%arg0: i32) -> (i32, i32, i32, i32) {
    %c0_i32 = arith.constant 0 : i32
    %c0_i32_0 = arith.constant 0 : i32
    %c0_i32_1 = arith.constant 0 : i32
    %c0_i32_2 = arith.constant 0 : i32
    return %c0_i32, %arg0, %c0_i32_0, %c0_i32_1 : i32, i32, i32, i32
  }
  func.func @transform_2(%arg0: i32) -> (i32, i32) {
    %c0_i32 = arith.constant 0 : i32
    %c0_i32_0 = arith.constant 0 : i32
    return %c0_i32, %arg0 : i32, i32
  }
  func.func @transform_3(%arg0: i32) -> (i32, i32) {
    %c0_i32 = arith.constant 0 : i32
    %c0_i32_0 = arith.constant 0 : i32
    return %c0_i32, %arg0 : i32, i32
  }
}

</mosaic_0001>

<bundles_post_ra>
// kernel: _forward_impl.1
= control target key start
LH: loop header
LB: loop body
LE: loop exit
PB: predicated region body
PF: predicated region fallthrough
CT: control target
= control target key end

     0   :  { %8 = vsyncpa [#allocation3], 0  ;;  %s250_s15 = smov [#allocation2]   ;;  %s251_s17 = smov 64   ;;  %s288_s0 = inlined_call_operand.vmem [shape: bf16[16,128], index: 0, kind: input, shape index: {}]   ;;  %s289_s1 = inlined_call_operand.hbm [shape: bf16[1,1,128,128], index: 1, kind: input, shape index: {}]   ;;  %s290_s2 = inlined_call_operand.vmem [shape: f32[1,128], index: 2, kind: input, shape index: {}]   ;;  %s291_s3 = inlined_call_operand.vmem [shape: f32[16,128], index: 3, kind: output, shape index: {}]  }
   0x1   :  { %s15_s14 = sshll.u32 %s289_s1, 4  ;;  %s17_s16 = sshll.u32 %s250_s15, 4  ;;  %s16_s14 = int_to_ptr.hbm [resolvable:$true] %s15_s14  ;;  %s18_s16 = int_to_ptr.vmem [resolvable:$true] %s17_s16 }
   0x2   :  { %s252_s18 = smov 4  }
   0x3   :  { %23 = dma.hbm_to_vmem [thread:$0]  %s16_s14, 1024, %s18_s16, [#allocation3], %s251_s17, %s251_s17, %s252_s18  }
   0x4   :  { %248 = dma.done.wait [#allocation3], 1024  }
   0x5   :  { %249 = vsyncadd [#allocation3], 4294966272  ;;  %v211_v0 = vld [vmem:[#allocation2 + $0x38] sm:$0xff]  ;;  %v210_v1 = vld [vmem:[#allocation2 + $0x30] sm:$0xff] }
   0x6   :  { %106 = vmatpush.bf16.msra.mxu0 %v211_v0  ;;  %v209_v2 = vld [vmem:[#allocation2 + $0x28] sm:$0xff]  ;;  %v208_v3 = vld [vmem:[#allocation2 + $0x20] sm:$0xff]  ;;  %v207_v4 = vld [vmem:[#allocation2 + $0x18] sm:$0xff] }
   0x7   :  { %v206_v5 = vld [vmem:[#allocation2 + $0x10] sm:$0xff]  ;;  %v205_v6 = vld [vmem:[#allocation2 + $0x8] sm:$0xff]  ;;  %v204_v7 = vld [vmem:[#allocation2] sm:$0xff] }
   0x8   :  { %v203_v8 = vld [vmem:[%s288_s0] sm:$0xff] }
   0x9   :  { %v215_v9 = vld [vmem:[%s290_s2] ss:$0 sm:$0xff] }
   0xa   :  { %107 = vmatpush.bf16.msra.mxu0 %v210_v1 }
   0xe   :  { %108 = vmatpush.bf16.msra.mxu0 %v209_v2 }
  0x12   :  { %109 = vmatpush.bf16.msra.mxu0 %v208_v3 }
  0x16   :  { %110 = vmatpush.bf16.msra.mxu0 %v207_v4 }
  0x1a   :  { %111 = vmatpush.bf16.msra.mxu0 %v206_v5 }
  0x1e   :  { %112 = vmatpush.bf16.msra.mxu0 %v205_v6 }
  0x22   :  { %113 = vmatpush.bf16.msra.mxu0 %v204_v7 }
  0x25   :  { %114 = vmatmul.bf16.vlgmr.msra.gmra.mxu0 %v203_v8 }
  0xa2   :  { %v115_v10 = vpop.f32.mrf.mxu0 }
  0xa3   :  { %v116_v11 = vadd.f32 %v215_v9, %v115_v10 }
  0xa5   :  { %v201_v12 = vmul.f32 -1.442695, %v116_v11 }
  0xa7   :  { %216 = vpow2.f32 %v201_v12 }
  0xaa   :  { %v117_v13 = vpop.f32.mrf.mxu0 }
  0xab   :  { %v118_v14 = vadd.f32 %v215_v9, %v117_v13 }
  0xad   :  { %v217_v15 = vpop.eup %216  ;;  %v202_v16 = vmul.f32 -1.442695, %v118_v14 }
  0xae   :  { %v126_v17 = vadd.f32 1.0, %v217_v15 }
  0xaf   :  { %218 = vpow2.f32 %v202_v16 }
  0xb0   :  { %220 = vrcp.f32 %v126_v17  ;;  %v139_v23 = vand.u32 2147483648, %v126_v17  ;;  %v137_v25 = vand.u32 2147483647, %v126_v17  ;;  %vm133_vm1 = vweird.f32 %v126_v17 }
  0xb2   :  { %v140_v28 = vor.u32 1.1754944e-38, %v139_v23  ;;  %vm138_vm3 = vcmp.eq.f32.partialorder %v137_v25, 8.507059e+37 }
  0xb5   :  { %v219_v18 = vpop.eup %218 }
  0xb6   :  { %v221_v19 = vpop.eup %220  ;;  %v127_v20 = vadd.f32 1.0, %v219_v18 }
  0xb7   :  { %v129_v21 = vmul.f32 %v221_v19, %v126_v17  ;;  %vm134_vm0 = vweird.f32 %v221_v19 }
  0xb8   :  { %222 = vrcp.f32 %v127_v20  ;;  %vm135_vm2 = vmor %vm133_vm1, %vm134_vm0  ;;  %v154_v33 = vand.u32 2147483648, %v127_v20  ;;  %v152_v35 = vand.u32 2147483647, %v127_v20  ;;  %vm148_vm5 = vweird.f32 %v127_v20 }
  0xb9   :  { %v130_v22 = vsub.f32 1.0, %v129_v21 }
  0xba   :  { %v155_v37 = vor.u32 1.1754944e-38, %v154_v33  ;;  %vm153_vm7 = vcmp.eq.f32.partialorder %v152_v35, 8.507059e+37 }
  0xbb   :  { %v131_v24 = vmul.f32 %v221_v19, %v130_v22 }
  0xbd   :  { %v132_v26 = vadd.f32 %v221_v19, %v131_v24 }
  0xbe   :  { %v223_v27 = vpop.eup %222 }
  0xbf   :  { %v136_v29 = vsel %vm135_vm2, %v221_v19, %v132_v26  ;;  %v144_v30 = vmul.f32 %v223_v27, %v127_v20  ;;  %vm149_vm4 = vweird.f32 %v223_v27 }
  0xc0   :  { %v141_v31 = vsel %vm138_vm3, %v140_v28, %v136_v29  ;;  %vm150_vm6 = vmor %vm148_vm5, %vm149_vm4 }
  0xc1   :  { %158 = vst [vmem:[%s291_s3] sm:$0xff] %v141_v31  ;;  %v145_v32 = vsub.f32 1.0, %v144_v30 }
  0xc3   :  { %v146_v34 = vmul.f32 %v223_v27, %v145_v32 }
  0xc5   :  { %v147_v36 = vadd.f32 %v223_v27, %v146_v34 }
  0xc7   :  { %v151_v38 = vsel %vm150_vm6, %v223_v27, %v147_v36 }
  0xc8   :  { %v156_v39 = vsel %vm153_vm7, %v155_v37, %v151_v38 }
  0xc9   :  { %159 = vst [vmem:[%s291_s3 + $0x8] sm:$0xff] %v156_v39 }
  0xca   :  { %164 = vsyncpa [#allocation3], 1 }

</bundles_post_ra>
